<compile_context>
chip_gen: v7x
topology: tpu7x:2x2x1
jax: 0.10.0
libtpu: 0.0.40
codegen_flags: <defaults>
</compile_context>

<pallas_src>
import functools

import jax
import jax.numpy as jnp
from jax.experimental import pallas as pl
from jax.experimental.pallas import tpu as pltpu


def _round_up(v, m):
    return ((v + m - 1) // m) * m


def _sublane(dtype):
    # native sublane tile for packed dtypes
    return {4: 8, 2: 16, 1: 32}.get(jnp.dtype(dtype).itemsize, 8)


def _masked_slab(x_ref, halo_ref, l0, L, Lt, Hk):
    """(Lt+Hk, D) slab = [current tile ; Hk halo rows], rows with global index
    >= L zeroed once (== F.pad(..., 0) semantics). Single compare+select."""
    cur = x_ref[0]                                  # (Lt, D)
    halo = halo_ref[0]                              # (Hk, D)
    xcat = jnp.concatenate([cur, halo], axis=0)     # (Lt+Hk, D)
    row = jax.lax.broadcasted_iota(jnp.int32, (Lt + Hk, 1), 0)
    return jnp.where(l0 + row < L, xcat, jnp.zeros((), xcat.dtype))


def _pool_kernel(x_ref, halo_ref, out_ref, *, L, Lt, Hk, K, mode):
    l0 = pl.program_id(1) * Lt
    xcat = _masked_slab(x_ref, halo_ref, l0, L, Lt, Hk)
    if mode != 'conv_max' and xcat.dtype != jnp.float32:
        xcat = xcat.astype(jnp.float32)             # f32 accumulation for sum/mean
    acc = xcat[0:Lt, :]
    for k in range(1, K):                           # K small & static -> unrolled
        win = xcat[k:k + Lt, :]                     # static sublane-offset slice
        acc = jnp.maximum(acc, win) if mode == 'conv_max' else acc + win
    if mode == 'conv_mean':
        acc = acc * (1.0 / K)
    out_ref[0] = acc.astype(out_ref.dtype)          # lane-dense (Lt, D) store


def _conv_kernel(x_ref, halo_ref, w_ref, b_ref, out_ref, *, L, Lt, Hk, K):
    # w_ref: (K*D_in, D_out) im2col weight, b_ref: (1, D_out)
    l0 = pl.program_id(1) * Lt
    xcat = _masked_slab(x_ref, halo_ref, l0, L, Lt, Hk)
    if K > 1:
        # im2col: lane-axis concat of the K shifted windows -> one MXU pass
        # with a K*D-wide contraction (fills the 256-wide MXU on v6e/v7x).
        slab = jnp.concatenate([xcat[k:k + Lt, :] for k in range(K)], axis=-1)
    else:
        slab = xcat[0:Lt, :]
    # Native-dtype operands (bf16 stays bf16), f32 accumulation on the MXU.
    acc = jnp.dot(slab, w_ref[...], preferred_element_type=jnp.float32)
    acc = acc + b_ref[...].astype(jnp.float32)      # (1, D_out) broadcast
    out_ref[0] = acc.astype(out_ref.dtype)


def span_conv_block(x, kernel_size, span_mode='conv_max',
                    weight=None, bias=None, block_l=512):
    """JAX/Pallas equivalent of SpanConvBlock.forward.

    x: (B, L, D).  For span_mode='conv_conv', weight is the Conv1d weight of
    shape (D_out, D_in, K) and bias of shape (D_out,).  Returns (B, L, D_out).
    """
    if span_mode not in ('conv_conv', 'conv_max', 'conv_mean', 'conv_sum'):
        # 'conv_normal' is undefined in the reference module (no self.conv).
        raise ValueError(f"unsupported span_mode: {span_mode}")

    B, L, D = x.shape
    K = int(kernel_size)
    item = jnp.dtype(x.dtype).itemsize
    sub = _sublane(x.dtype)

    # Halo = first K-1 rows of the next tile, rounded to the sublane tile.
    Hk = _round_up(max(K - 1, 1), sub)
    # Sequence tile: multiple of Hk (hence of the sublane tile), capped by L.
    Lt = min(_round_up(max(block_l, 1), Hk), _round_up(L, Hk))
    Lt = max(Lt, Hk)

    is_conv = span_mode == 'conv_conv'
    if is_conv:
        if weight is None or bias is None:
            raise ValueError("conv_conv requires weight and bias")
        D_out, D_in, Kw = weight.shape
        assert D_in == D and Kw == K, (weight.shape, D, K)
        # (D_out, D_in, K) -> (K, D_in, D_out) -> (K*D_in, D_out): im2col layout.
        w2d = jnp.transpose(weight, (2, 1, 0)).reshape(K * D, D_out)
        b2 = bias.reshape(1, D_out)
        wt_item = jnp.dtype(weight.dtype).itemsize
    else:
        D_out = D
        wt_item = 0

    # Explicit VMEM estimate including in-kernel temporaries (concat + mask
    # copies, f32 accumulator, im2col slab), not just the I/O blocks.
    def est_bytes(lt):
        io = 2 * (lt * D * item + Hk * D * item + lt * D_out * item)  # dbl-buffered
        cat = 2 * (lt + Hk) * D * item                    # concat copy + mask copy
        if is_conv:
            params = 2 * (K * D * D_out + D_out) * wt_item
            tmp = lt * K * D * item + lt * D_out * 4      # im2col slab + f32 acc
        else:
            params = 0
            acc_item = item if span_mode == 'conv_max' else 4
            tmp = (lt + Hk) * D * acc_item + lt * D * 4   # upcast copy + acc
        return io + cat + params + tmp

    try:
        vmem_cap = int(pltpu.get_tpu_info().vmem_capacity_bytes)
    except Exception:  # be conservative if the query is unavailable
        vmem_cap = 64 * 1024 * 1024
    budget = vmem_cap * 3 // 4            # headroom: ~48 MiB on v7x, 96 on v5e/v6e
    while est_bytes(Lt) > budget and Lt > Hk:
        Lt = max(Hk, _round_up(Lt // 2, Hk))   # shrink the tile, not the limit
    vmem_limit = int(min(max(est_bytes(Lt) * 3 // 2, 16 * 1024 * 1024), budget))

    nL = pl.cdiv(L, Lt)
    n_halo = pl.cdiv(L, Hk)
    halo_ratio = Lt // Hk                 # Lt % Hk == 0 by construction

    x_spec = pl.BlockSpec((1, Lt, D), lambda b, i: (b, i, 0))
    # Halo: first Hk rows of the NEXT tile; clamped block index only triggers
    # when those rows are past the real sequence, where they are masked anyway.
    halo_spec = pl.BlockSpec(
        (1, Hk, D),
        lambda b, i: (b, jnp.minimum((i + 1) * halo_ratio, n_halo - 1), 0))
    out_spec = pl.BlockSpec((1, Lt, D_out), lambda b, i: (b, i, 0))

    io_bytes = B * L * D * item + B * L * D_out * item + B * nL * Hk * D * item
    if is_conv:
        in_specs = [x_spec, halo_spec,
                    pl.BlockSpec((K * D, D_out), lambda b, i: (0, 0)),  # constant
                    pl.BlockSpec((1, D_out), lambda b, i: (0, 0))]
        args = (x, x, w2d, b2)
        kernel = functools.partial(_conv_kernel, L=L, Lt=Lt, Hk=Hk, K=K)
        flops = 2 * B * L * K * D * D_out
        io_bytes += (K * D * D_out + D_out) * wt_item
    else:
        in_specs = [x_spec, halo_spec]
        args = (x, x)
        kernel = functools.partial(_pool_kernel, L=L, Lt=Lt, Hk=Hk, K=K,
                                   mode=span_mode)
        flops = B * L * D * max(K - 1, 1)

    return pl.pallas_call(
        kernel,
        out_shape=jax.ShapeDtypeStruct((B, L, D_out), x.dtype),
        grid_spec=pltpu.PrefetchScalarGridSpec(
            num_scalar_prefetch=0,
            grid=(B, nL),
            in_specs=in_specs,
            out_specs=out_spec,
        ),
        compiler_params=pltpu.CompilerParams(
            dimension_semantics=("parallel", "parallel"),
            vmem_limit_bytes=vmem_limit,
        ),
        cost_estimate=pl.CostEstimate(
            flops=int(flops), transcendentals=0, bytes_accessed=int(io_bytes)),
    )(*args)


def _reference(x, kernel_size, span_mode, weight=None, bias=None):
    """Pure-JAX transcription of the PyTorch forward for verification."""
    B, L, D = x.shape
    K = kernel_size
    xp = jnp.pad(x, ((0, 0), (0, K - 1), (0, 0)))
    if span_mode == 'conv_conv':
        out = sum(jnp.einsum('bld,ed->ble', xp[:, k:k + L, :], weight[:, :, k])
                  for k in range(K))
        return out + bias[None, None, :]
    wins = jnp.stack([xp[:, k:k + L, :] for k in range(K)], axis=-1)  # (B,L,D,K)
    if span_mode == 'conv_max':
        return wins.max(axis=-1)
    if span_mode == 'conv_mean':
        return wins.mean(axis=-1)
    if span_mode == 'conv_sum':
        return wins.sum(axis=-1)
    raise ValueError(span_mode)


if __name__ == "__main__":
    B, L, D = 2, 16, 128
    kernel_size = 3

    key = jax.random.PRNGKey(0)
    kx, kw, kb = jax.random.split(key, 3)
    x = jax.random.normal(kx, (B, L, D), dtype=jnp.float32)
    weight = jax.random.normal(kw, (D, D, kernel_size), dtype=jnp.float32)
    weight = weight / jnp.sqrt(D * kernel_size)
    bias = 0.1 * jax.random.normal(kb, (D,), dtype=jnp.float32)

    # block_l=8 so the demo exercises the L-tiling + small-halo path (nL = 2).
    for mode in ("conv_max", "conv_mean", "conv_sum", "conv_conv"):
        w = weight if mode == "conv_conv" else None
        b = bias if mode == "conv_conv" else None
        out = span_conv_block(x, kernel_size, span_mode=mode,
                              weight=w, bias=b, block_l=8)
        out = jax.block_until_ready(out)
        ref = _reference(x, kernel_size, mode, weight=w, bias=b)
        assert out.shape == ref.shape, (mode, out.shape)
        # conv_conv tolerance is loose only because the pure-JAX reference
        # einsum may run at default (bf16-pass) matmul precision on TPU.
        tol = 5e-2 if mode == "conv_conv" else 1e-5
        assert jnp.allclose(out, ref, atol=tol, rtol=tol), f"{mode} mismatch"

    # bf16 path: native-dtype max reduction, 16-row sublane tile, masked halo.
    xb = x.astype(jnp.bfloat16)
    outb = jax.block_until_ready(
        span_conv_block(xb, kernel_size, span_mode="conv_max"))
    refb = _reference(xb, kernel_size, "conv_max")
    assert jnp.array_equal(outb, refb), "bf16 conv_max mismatch"

    print("KERNEL_OK")
</pallas_src>

<mosaic_0001>
module attributes {stable_mosaic.version = 11 : i64} {
  func.func @_pool_kernel(%arg0: i32, %arg1: i32, %arg2: memref<1x8x128xf32, #tpu.memory_space<vmem>>, %arg3: memref<1x8x128xf32, #tpu.memory_space<vmem>>, %arg4: memref<1x8x128xf32, #tpu.memory_space<vmem>>) attributes {dimension_semantics = [#tpu.dimension_semantics<parallel>, #tpu.dimension_semantics<parallel>], iteration_bounds = array<i64: 2, 2>, scalar_prefetch = 0 : i64, scratch_operands = 0 : i64, tpu.core_type = #tpu.core_type<tc>, window_params = [{transform_indices = @transform_0, window_bounds = array<i64: 1, 8, 128>}, {transform_indices = @transform_1, window_bounds = array<i64: 1, 8, 128>}, {transform_indices = @transform_2, window_bounds = array<i64: 1, 8, 128>}]} {
    %c8_i32 = arith.constant 8 : i32
    %0 = arith.muli %arg1, %c8_i32 : i32
    %c0 = arith.constant 0 : index
    %c0_0 = arith.constant 0 : index
    %c0_1 = arith.constant 0 : index
    %1 = vector.load %arg2[%c0, %c0_0, %c0_1] : memref<1x8x128xf32, #tpu.memory_space<vmem>>, vector<1x8x128xf32>
    %2 = vector.shape_cast %1 : vector<1x8x128xf32> to vector<8x128xf32>
    %c0_2 = arith.constant 0 : index
    %c0_3 = arith.constant 0 : index
    %c0_4 = arith.constant 0 : index
    %3 = vector.load %arg3[%c0_2, %c0_3, %c0_4] : memref<1x8x128xf32, #tpu.memory_space<vmem>>, vector<1x8x128xf32>
    %4 = vector.shape_cast %3 : vector<1x8x128xf32> to vector<8x128xf32>
    %5 = tpu.concatenate %2, %4 in 0 : vector<8x128xf32>, vector<8x128xf32> -> vector<16x128xf32>
    %6 = tpu.iota {dimensions = array<i32: 0>} : vector<16x1xi32>
    %7 = vector.broadcast %0 : i32 to vector<16x1xi32>
    %8 = arith.addi %7, %6 : vector<16x1xi32>
    %c16_i32 = arith.constant 16 : i32
    %9 = vector.broadcast %c16_i32 : i32 to vector<16x1xi32>
    %10 = arith.cmpi slt, %8, %9 : vector<16x1xi32>
    %cst = arith.constant 0.000000e+00 : f32
    %11 = vector.shape_cast %10 : vector<16x1xi1> to vector<16x1xi1>
    %12 = vector.broadcast %11 : vector<16x1xi1> to vector<16x128xi1>
    %13 = vector.broadcast %cst : f32 to vector<16x128xf32>
    %14 = arith.select %12, %5, %13 : vector<16x128xi1>, vector<16x128xf32>
    %15 = vector.extract_strided_slice %14 {offsets = [0, 0], sizes = [8, 128], strides = [1, 1]} : vector<16x128xf32> to vector<8x128xf32>
    %16 = vector.extract_strided_slice %14 {offsets = [1, 0], sizes = [8, 128], strides = [1, 1]} : vector<16x128xf32> to vector<8x128xf32>
    %17 = arith.maximumf %15, %16 : vector<8x128xf32>
    %18 = vector.extract_strided_slice %14 {offsets = [2, 0], sizes = [8, 128], strides = [1, 1]} : vector<16x128xf32> to vector<8x128xf32>
    %19 = arith.maximumf %17, %18 : vector<8x128xf32>
    %c0_5 = arith.constant 0 : index
    %c0_6 = arith.constant 0 : index
    %c0_7 = arith.constant 0 : index
    %20 = vector.load %arg4[%c0_5, %c0_6, %c0_7] : memref<1x8x128xf32, #tpu.memory_space<vmem>>, vector<1x8x128xf32>
    %21 = vector.shape_cast %20 : vector<1x8x128xf32> to vector<8x128xf32>
    %22 = vector.shape_cast %19 : vector<8x128xf32> to vector<1x8x128xf32>
    tpu.vector_store %arg4[%c0_5, %c0_6, %c0_7], %22 {strides = array<i32>} : memref<1x8x128xf32, #tpu.memory_space<vmem>>, vector<1x8x128xf32>,
    return
  }
  func.func @transform_0(%arg0: i32, %arg1: i32) -> (i32, i32, i32) {
    %c0_i32 = arith.constant 0 : i32
    %c0_i32_0 = arith.constant 0 : i32
    return %arg0, %arg1, %c0_i32 : i32, i32, i32
  }
  func.func @transform_1(%arg0: i32, %arg1: i32) -> (i32, i32, i32) {
    %c1_i32 = arith.constant 1 : i32
    %0 = arith.addi %arg1, %c1_i32 : i32
    %c1_i32_0 = arith.constant 1 : i32
    %1 = arith.muli %0, %c1_i32_0 : i32
    %c1_i32_1 = arith.constant 1 : i32
    %2 = arith.minsi %1, %c1_i32_1 : i32
    %c0_i32 = arith.constant 0 : i32
    %c0_i32_2 = arith.constant 0 : i32
    return %arg0, %2, %c0_i32 : i32, i32, i32
  }
  func.func @transform_2(%arg0: i32, %arg1: i32) -> (i32, i32, i32) {
    %c0_i32 = arith.constant 0 : i32
    %c0_i32_0 = arith.constant 0 : i32
    return %arg0, %arg1, %c0_i32 : i32, i32, i32
  }
}

</mosaic_0001>

<bundles_post_ra>
// kernel: tpu_custom_call.1
= control target key start
LH: loop header
LB: loop body
LE: loop exit
PB: predicated region body
PF: predicated region fallthrough
CT: control target
= control target key end

     0   :  { %7 = vsyncpa [#allocation3], 0  ;;  %s1028_s0 = inlined_call_operand.hbm [shape: f32[2,16,128], index: 0, kind: input, shape index: {}]   ;;  %s1029_s1 = inlined_call_operand.hbm [shape: f32[2,16,128], index: 1, kind: input, shape index: {}]   ;;  %s1030_s2 = inlined_call_operand.hbm [shape: f32[2,16,128], index: 2, kind: output, shape index: {}]  }
   0x1   :  { %9 = vsyncpa [#allocation3 + $0x1], 0 }
   0x2   :  { %10 = vsyncpa [#allocation6], 0 }
   0x3   :  { %12 = vsyncpa [#allocation6 + $0x1], 0 }
   0x4   :  { %13 = vsyncpa [#allocation4], 0 }
   0x5   :  { %15 = vsyncpa [#allocation4 + $0x1], 0  ;;  %s724_s9 = smov 0   ;;  %s726_s10 = smov 0  }
   0x6   :  { %s728_s11 = smov 0   ;;  %s730_s12 = smov 0  }
   0x7   :  { %s732_s13 = smov 0   ;;  %s734_s14 = smov 0  }
   0x8   :  { %s736_s15 = smov 0   ;;  %s738_s16 = smov 0  }
   0x9   :  { %s740_s17 = smov 0   ;;  %s742_s18 = smov 0  }
   0xa   :  { %s744_s19 = smov 0  }
   0xb LB: > { %1039 = sst [smem:[#allocation11_spill]] %s676_s12  ;;  %s388_s20 = sadd.s32 4294967295, %s704_s19   ;;  %s704_s19 = sphi %s744_s19, %s21_s19   ;;  %s700_s18 = sphi %s742_s18, %s1071_s18   ;;  %s696_s17 = sphi %s740_s17, %s1070_s17   ;;  %s692_s16 = sphi %s738_s16, %s1069_s16   ;;  %s688_s15 = sphi %s736_s15, %s1068_s15   ;;  %s684_s14 = sphi %s734_s14, %s1067_s14   ;;  %s680_s13 = sphi %s732_s13, %s1066_s13   ;;  %s676_s12 = sphi %s730_s12, %s1065_s12   ;;  %s672_s11 = sphi %s728_s11, %s1064_s11   ;;  %s668_s10 = sphi %s726_s10, %s1063_s10   ;;  %s664_s9 = sphi %s724_s9, %s1062_s9  }
   0xc   : > { %s389_s21 = sadd.s32 4294967294, %s704_s19   ;;  %s30_s22 = sadd.s32 1, %s696_s17 }
   0xd   : > { %s33_s23 = sadd.s32 1, %s700_s18  ;;  %p31_p0 = scmp.ge.s32.totalorder %s30_s22, 2 }
   0xe   : > { %s42_s24 = sadd.s32 1, %s684_s14  ;;  %p49_p1 = scmp.ne.s32.totalorder %s684_s14, %s680_s13 }
   0xf   : > { %p1035_p2 = scmp.eq.s32.totalorder %s704_s19, 0  ;;  %s1073_s22 = smov (%p31_p0, %s30_s22), 0 }
  0x10   : > { %1040 = sst [smem:[#allocation12_spill]] %s1073_s22  ;;  %s1075_s23 = smov (!%p31_p0, %s33_s23), %s700_s18 }
  0x11   : > { %s38_s25 = ssub.s32 %s696_s17, %s1073_s22  ;;  %p794_p3 = por %p1035_p2, %p49_p1 }
  0x12   : > { %p35_p4 = scmp.ge.s32.totalorder %s1075_s23, 2  ;;  %p55_p5 = scmp.ne.s32.totalorder %s680_s13, %s676_s12 }
  0x13   : > { %p800_p6 = scmp.eq.s32.totalorder %s388_s20, 0  ;;  %p115_p7 = scmp.eq.s32.totalorder %s388_s20, 3 }
  0x14   : > { %s1077_s23 = smov (%p35_p4, %s1075_s23), 0  ;;  %p121_p10 = scmp.eq.s32.totalorder %s389_s21, 3 }
  0x15   : > { %1043 = sst [smem:[#allocation13_spill]] %s1077_s23  ;;  %p808_p8 = por %p800_p6, %p55_p5 }
  0x16   : > { %p812_p9 = por %p115_p7, %p49_p1  ;;  %s818_s30 = ssub.s32 %s700_s18, %s1077_s23 }
  0x17   : > { %s1044_s28 = scalar_select %p808_p8, 1, 0 }
  0x18   : > { %s1045_s29 = scalar_select %p812_p9, 1, 0 }
  0x19   : > { %s39_s3 = sor.u32 %s38_s25, %s818_s30  ;;  %p821_p12 = por %p121_p10, %p55_p5 }
  0x1a   : > { %p40_p11 = scmp.eq.s32.totalorder %s39_s3, 0  ;;  %p1034_p13 = scmp.lt.s32.totalorder %s704_s19, 4 }
  0x1b   : > { %s1046_s4 = scalar_select %p821_p12, 1, 0 }
  0x1c   : > { %s141_s5 = sand.u32 1, %s684_s14   ;;  %s393_s8 = sshll.u32 %s700_s18, 1 }
  0x1d   : > { %s828_s6 = scalar_select %p40_p11, %s684_s14, %s42_s24  }
  0x1e   : > { %s392_s7 = sshll.u32 %s141_s5, 3  ;;  %s150_s20 = sadd.s32 %s696_s17, %s393_s8 }
  0x1f   : > { %s145_s23 = scalar_lea.vmem [#allocation2], %s392_s7  ;;  %s394_s12 = sshll.u32 %s150_s20, 7 }
  0x20   : > { %s154_s22 = sshll.u32 %s145_s23, 4  ;;  %s837_s3 = scalar_lea.hbm %s1028_s0, %s394_s12  ;;  %s832_s22 = int_to_ptr.vmem [resolvable:$true] %s154_s22 }
  0x21   : > { %p843_p0 = pnand %p1034_p13, %p794_p3  ;;  %s142_s23 = scalar_lea.sflag [#allocation3], %s141_s5 }
  0x22   : > { %s515_s7 = scalar_lea.hbm %s837_s3, 128  ;;  %s520_s8 = scalar_lea.hbm %s1028_s0, 512 }
  0x23   : > { %p516_p5 = scmp.ne.s32.totalorder %s837_s3, %s515_s7  ;;  %p517_p7 = pneg %p843_p0 }
  0x24   : > { %p521_p3 = scmp.lt.u32.totalorder %s837_s3, %s1028_s0  ;;  %p522_p13 = scmp.lt.u32.totalorder %s520_s8, %s515_s7 }
  0x25   : > { %p518_p10 = pnand %p517_p7, %p516_p5  ;;  %p524_p1 = scmp.lt.u32.totalorder %s515_s7, %s837_s3 }
  0x26   : > { %p523_p2 = por %p522_p13, %p521_p3 }
  0x27   : > { %p519_p11 = pneg %p518_p10 }
  0x28   : > { %p525_p4 = por %p524_p1, %p523_p2 }
  0x2a   : > { %p526_p12 = pnand %p525_p4, %p519_p11 }
  0x2c   : > { %529 = shalt.err (!%p526_p12)
}
  0x2d   : > { %s530_s5 = scalar_lea.vmem %s832_s22, 128  ;;  %s706_s25 = smov [#allocation2]  }
  0x2e   : > { %p531_p5 = scmp.ne.s32.totalorder %s832_s22, %s530_s5  ;;  %s535_s12 = sshll.u32 %s706_s25, 4  ;;  %s536_s12 = int_to_ptr.vmem [resolvable:$false] %s535_s12 }
  0x2f   : > { %s537_s26 = scalar_lea.vmem %s536_s12, 256  ;;  %p538_p8 = scmp.lt.s32.totalorder %s832_s22, %s536_s12 }
  0x30   : > { %p533_p10 = pnand %p531_p5, %p517_p7  ;;  %p539_p13 = scmp.lt.s32.totalorder %s537_s26, %s530_s5 }
  0x32   : > { %p534_p9 = pneg %p533_p10  ;;  %p540_p3 = por %p539_p13, %p538_p8 }
  0x34   : > { %p541_p2 = pnand %p540_p3, %p534_p9 }
  0x36   : > { %544 = shalt.err (!%p541_p2)
}
  0x37   : > { %417 = dma.hbm_to_vmem [thread:$0]  (!%p843_p0), %s837_s3, 128, %s832_s22, %s142_s23  }
  0x38   : > { %p1048_p8 = scmp.lt.s32.totalorder %s704_s19, 5  ;;  %p1049_p9 = scmp.ge.s32.totalorder %s704_s19, 1 }
  0x39   : > { %p83_p1 = scmp.ne.s32.totalorder %s672_s11, %s668_s10  ;;  %p89_p4 = scmp.ne.s32.totalorder %s668_s10, %s664_s9 }
  0x3a   : > { %p878_p12 = pnand %p1049_p9, %p1048_p8  ;;  %s161_s7 = sand.u32 1, %s672_s11  }
  0x3b   : > { %s76_s8 = sadd.s32 1, %s672_s11  ;;  %p74_p7 = scmp.eq.s32.totalorder %s818_s30, 0 }
  0x3c   : > { %p891_p11 = por %p89_p4, %p800_p6  ;;  %p1052_p5 = scmp.eq.s32.totalorder %s704_s19, 0 }
  0x3d   : > { %s395_s22 = sshll.u32 %s161_s7, 3  ;;  %s661_s23 = sshll.u32 %s700_s18, 8 }
  0x3e   : > { %s1051_s20 = scalar_select %p891_p11, 1, 0 }
  0x3f   : > { %p85_p10 = por %p83_p1, %p1052_p5  ;;  %s660_s21 = sadd.s32 128, %s661_s23 }
  0x40   : > { %s898_s3 = scalar_select %p74_p7, %s672_s11, %s76_s8  }
  0x41   : > { %s165_s5 = scalar_lea.vmem [#allocation5], %s395_s22  ;;  %s904_s9 = scalar_lea.hbm %s1029_s1, %s660_s21 }
  0x42   : > { %s177_s25 = sshll.u32 %s165_s5, 4  ;;  %p1053_p6 = scmp.lt.s32.totalorder %s704_s19, 4  ;;  %s906_s25 = int_to_ptr.vmem [resolvable:$true] %s177_s25 }
  0x43   : > { %s162_s30 = scalar_lea.sflag [#allocation6], %s161_s7  ;;  %s545_s8 = scalar_lea.hbm %s904_s9, 128 }
  0x44   : > { %p910_p0 = pnand %p1053_p6, %p85_p10  ;;  %p546_p13 = scmp.ne.s32.totalorder %s904_s9, %s545_s8 }
  0x45   : > { %s550_s21 = scalar_lea.hbm %s1029_s1, 512  ;;  %p551_p9 = scmp.lt.u32.totalorder %s904_s9, %s1029_s1 }
  0x46   : > { %p547_p3 = pneg %p910_p0  ;;  %p552_p1 = scmp.lt.u32.totalorder %s550_s21, %s545_s8 }
  0x47   : > { %p554_p7 = scmp.lt.u32.totalorder %s545_s8, %s904_s9 }
  0x48   : > { %p548_p2 = pnand %p547_p3, %p546_p13  ;;  %p553_p4 = por %p552_p1, %p551_p9 }
  0x4a   : > { %p549_p8 = pneg %p548_p2  ;;  %p555_p5 = por %p554_p7, %p553_p4 }
  0x4c   : > { %p556_p10 = pnand %p555_p5, %p549_p8 }
  0x4e   : > { %559 = shalt.err (!%p556_p10)
}
  0x4f   : > { %s560_s7 = scalar_lea.vmem %s906_s25, 128  ;;  %s707_s26 = smov [#allocation5]  }
  0x50   : > { %p561_p6 = scmp.ne.s32.totalorder %s906_s25, %s560_s7  ;;  %s565_s22 = sshll.u32 %s707_s26, 4  ;;  %s566_s22 = int_to_ptr.vmem [resolvable:$false] %s565_s22 }
  0x51   : > { %s567_s23 = scalar_lea.vmem %s566_s22, 256  ;;  %p568_p11 = scmp.lt.s32.totalorder %s906_s25, %s566_s22 }
  0x52   : > { %p563_p13 = pnand %p561_p6, %p547_p3  ;;  %p569_p9 = scmp.lt.s32.totalorder %s567_s23, %s560_s7 }
  0x54   : > { %p564_p2 = pneg %p563_p13  ;;  %p570_p1 = por %p569_p9, %p568_p11 }
  0x56   : > { %p571_p4 = pnand %p570_p1, %p564_p2 }
  0x58   : > { %574 = shalt.err (!%p571_p4)
}
  0x59   : > { %420 = dma.hbm_to_vmem [thread:$0]  (!%p910_p0), %s904_s9, 128, %s906_s25, %s162_s30  }
  0x5a   : > { %186 = sbr.rel (%p878_p12) target bundleno = 133 (0x85), region = 28  ;;  %s942_s8 = sand.u32 (!%p878_p12), 1, %s680_s13  }
  0x5b   : > { %s399_s21 = sshll.u32 (!%p878_p12), %s942_s8, 3  ;;  %s189_s5 = scalar_lea.sflag (!%p878_p12), [#allocation3], %s942_s8 }
  0x5c   : > { %s192_s12 = scalar_lea.vmem (!%p878_p12), [#allocation2], %s399_s21  ;;  %p1055_p11 = scmp.ne.s32.totalorder (!%p878_p12), %s1044_s28, 0 }
  0x61   : > { %648 = dma.done.wait (%p1055_p11), %s189_s5, 128  }
  0x62   : > { %650 = vsyncadd (%p1055_p11), %s189_s5, 4294967168  ;;  %s197_s24 = sand.u32 1, %s668_s10   ;;  %p1056_p12 = scmp.ne.s32.totalorder %s1051_s20, 0 }
  0x63   : > { %s400_s25 = sshll.u32 %s197_s24, 3  ;;  %s198_s9 = scalar_lea.sflag [#allocation6], %s197_s24 }
  0x64   : > { %s201_s27 = scalar_lea.vmem [#allocation5], %s400_s25 }
  0x65   : > { %652 = dma.done.wait (%p1056_p12), %s198_s9, 128  }
  0x66   : > { %654 = vsyncadd (%p1056_p12), %s198_s9, 4294967168  ;;  %s402_s30 = sshll.u32 %s688_s15, 3  ;;  %v233_v0 = vlaneseq  ;;  %s404_s28 = sshll.u32 %s692_s16, 1  ;;  %v231_v6 = vld [vmem:[%s192_s12] sm:$0xff]  ;;  %v232_v7 = vld [vmem:[%s201_s27] sm:$0xff]  ;;  %vm249_vm2 = vcmask 1046528  }
  0x67   : > { %v236_v1 = vstv %s402_s30  ;;  %vm255_vm3 = vcmask 1045504   ;;  %s274_s20 = sadd.s32 %s688_s15, %s404_s28  ;;  %s226_s7 = scalar_lea.vmem [#allocation7], %s399_s21 }
  0x68   : > { %v234_v2 = vshrl.u32 %v233_v0, 7  ;;  %s278_s26 = sshll.u32 %s226_s7, 4  ;;  %s405_s16 = sshll.u32 %s274_s20, 7  ;;  %s962_s26 = int_to_ptr.vmem [resolvable:$true] %s278_s26 }
  0x69   : > { %s967_s15 = scalar_lea.hbm %s1030_s2, %s405_s16  ;;  %s263_s5 = scalar_lea.sflag [#allocation4], %s942_s8 }
  0x6a   : > { %v235_v3 = vadd.s32 8, %v234_v2  ;;  %v237_v4 = vadd.s32 %v236_v1, %v234_v2  ;;  %s575_s12 = scalar_lea.vmem %s962_s26, 128  ;;  %p1057_p3 = scmp.ne.s32.totalorder %s1045_s29, 0 }
  0x6b   : > { %p576_p0 = scmp.ne.s32.totalorder %s962_s26, %s575_s12  ;;  %s708_s21 = smov [#allocation7]  }
  0x6c   : > { %v238_v5 = vadd.s32 %v236_v1, %v235_v3  ;;  %vm239_vm0 = vcmp.lt.s32.totalorder %v237_v4, 16  ;;  %s579_s24 = sshll.u32 %s708_s21, 4  ;;  %s580_s24 = int_to_ptr.vmem [resolvable:$false] %s579_s24 }
  0x6d   : > { %v245_v8 = vsel %vm239_vm0, %v231_v6, 0.0  ;;  %p577_p8 = pnand %p576_p0, %p1057_p3  ;;  %s581_s25 = scalar_lea.vmem %s580_s24, 256 }
  0x6e   : > { %vm240_vm1 = vcmp.lt.s32.totalorder %v238_v5, 16  ;;  %v250_v10 = vrot.slane %v245_v8, 1  ;;  %v256_v11 = vrot.slane %v245_v8, 2  ;;  %p582_p5 = scmp.lt.s32.totalorder %s962_s26, %s580_s24  ;;  %p583_p10 = scmp.lt.s32.totalorder %s581_s25, %s575_s12 }
  0x6f   : > { %v246_v9 = vsel %vm240_vm1, %v232_v7, 0.0  ;;  %p578_p7 = pneg %p577_p8 }
  0x70   : > { %v251_v12 = vrot.slane %v246_v9, 1  ;;  %v257_v13 = vrot.slane %v246_v9, 2  ;;  %p584_p6 = por %p583_p10, %p582_p5 }
  0x72   : > { %v252_v14 = vsel %vm249_vm2, %v250_v10, %v251_v12  ;;  %v258_v15 = vsel %vm255_vm3, %v256_v11, %v257_v13  ;;  %p585_p13 = pnand %p584_p6, %p578_p7 }
  0x73   : > { %v254_v16 = vmax.f32 %v245_v8, %v252_v14 }
  0x75   : > { %v260_v17 = vmax.f32 %v254_v16, %v258_v15 }
  0x77   : > { %261 = vst [vmem:[%s226_s7] sm:$0xff] %v260_v17 }
  0x78   : > { %588 = shalt.err (!%p585_p13)
}
  0x79   : > { %s589_s8 = scalar_lea.hbm %s967_s15, 128  ;;  %s593_s30 = scalar_lea.hbm %s1030_s2, 512 }
  0x7a   : > { %p590_p2 = scmp.ne.s32.totalorder %s967_s15, %s589_s8  ;;  %p594_p4 = scmp.lt.u32.totalorder %s967_s15, %s1030_s2 }
  0x7b   : > { %p595_p11 = scmp.lt.u32.totalorder %s593_s30, %s589_s8  ;;  %p597_p0 = scmp.lt.u32.totalorder %s589_s8, %s967_s15 }
  0x7c   : > { %p591_p9 = pnand %p590_p2, %p1057_p3 }
  0x7d   : > { %p596_p12 = por %p595_p11, %p594_p4 }
  0x7e   : > { %p592_p1 = pneg %p591_p9 }
  0x7f   : > { %p598_p8 = por %p597_p0, %p596_p12 }
  0x81   : > { %p599_p7 = pnand %p598_p8, %p592_p1 }
  0x83   : > { %602 = shalt.err (!%p599_p7)
}
  0x84   : > { %412 = dma.vmem_to_hbm [thread:$0]  (%p1057_p3), %s962_s26, 128, %s967_s15, %s263_s5  }
  0x85 PF: > { %s1058_s7 = sld [smem:[#allocation11_spill]]  ;;  %p426_p5 = scmp.ge.s32.totalorder %s704_s19, 2 }
  0x86   : > { %p1059_p10 = scmp.ne.s32.totalorder %s1046_s4, 0 }
  0x88   : > { %p422_p6 = pnand %p426_p5, %p1059_p10 }
  0x8b   : > { %s290_s16 = sand.u32 1, %s1058_s7  }
  0x8c   : > { %s291_s22 = scalar_lea.sflag [#allocation4], %s290_s16 }
  0x8d   : > { %656 = dma.done.wait (!%p422_p6), %s291_s22, 128  }
  0x8e   : > { %658 = vsyncadd (!%p422_p6), %s291_s22, 4294967168  ;;  %s21_s19 = sadd.s32 1, %s704_s19   ;;  %s1060_s29 = sld [smem:[#allocation12_spill]] }
  0x8f   : > { %p18_p13 = scmp.ge.s32.totalorder %s21_s19, 6   ;;  %s1061_s26 = sld [smem:[#allocation13_spill]] }
  0x90   : > { %s1062_s9 = smov %s668_s10  ;;  %s1063_s10 = smov %s672_s11 }
  0x91   : > { %s1064_s11 = smov %s898_s3  ;;  %s1065_s12 = smov %s680_s13 }
  0x92   : > { %s1066_s13 = smov %s684_s14  ;;  %s1067_s14 = smov %s828_s6 }
  0x93   : > { %s1068_s15 = smov %s696_s17  ;;  %s1069_s16 = smov %s700_s18 }
  0x94   : > { %s1070_s17 = smov %s1060_s29  ;;  %20 = sbr.rel (!%p18_p13) target bundleno = 11 (0xb), region = 86 }
  0x95   : > { %s1071_s18 = smov %s1061_s26 }
  0x9b   :  { %296 = vsyncpa [#allocation3], 1 }
  0x9c   :  { %298 = vsyncpa [#allocation3 + $0x1], 1 }
  0x9d   :  { %299 = vsyncpa [#allocation6], 1 }
  0x9e   :  { %301 = vsyncpa [#allocation6 + $0x1], 1 }
  0x9f   :  { %302 = vsyncpa [#allocation4], 1 }
  0xa0   :  { %304 = vsyncpa [#allocation4 + $0x1], 1 }

</bundles_post_ra>
